<compile_context>
chip_gen: v5e
topology: v5e:2x2
jax: 0.10.0
libtpu: 0.0.40
codegen_flags: <defaults>
</compile_context>

<pallas_src>
import jax
import jax.numpy as jnp
from jax.experimental import pallas as pl
from jax.experimental.pallas import tpu as pltpu


LANE = 1024           # lane-dense width (multiple of 128)
MAX_BLOCK_ROWS = 512  # f32 (512, 1024) tile = 2 MiB; 2 arrays x 2 buffers = 8 MiB


def _dropout_kernel(seed_ref, thr_ref, scale_ref, x_ref, o_ref):
    """Inverted dropout on one (block_rows, LANE) tile.

    seed_ref  : SMEM (1,) int32    — base PRNG seed
    thr_ref   : SMEM (1,) uint32   — drop threshold = round(p * 2^32)
    scale_ref : SMEM (1,) float32  — 1 / (1 - p)
    x_ref     : VMEM (R, C)        — input tile
    o_ref     : VMEM (R, C)        — output tile
    """
    rows, cols = x_ref.shape
    i = pl.program_id(0)

    # Globally-unique 32-bit counter per element (differs across grid tiles).
    row_ids = jax.lax.broadcasted_iota(jnp.int32, (rows, cols), 0).astype(jnp.uint32)
    col_ids = jax.lax.broadcasted_iota(jnp.int32, (rows, cols), 1).astype(jnp.uint32)
    base = i.astype(jnp.uint32) * jnp.uint32(rows)
    ctr = (base + row_ids) * jnp.uint32(cols) + col_ids

    # Counter-based hash (murmur3-style finalizer) mixed with the seed.
    # Pure VPU integer ops -> lowers both via Mosaic and in interpret mode.
    h = ctr ^ (seed_ref[0].astype(jnp.uint32) * jnp.uint32(0x9E3779B9))
    h = h ^ (h >> 16)
    h = h * jnp.uint32(0x7FEB352D)
    h = h ^ (h >> 15)
    h = h * jnp.uint32(0x846CA68B)
    h = h ^ (h >> 16)

    # Integer-threshold compare: keep with probability 1 - p.
    keep = h >= thr_ref[0]

    xv = x_ref[...]
    scale = scale_ref[0].astype(xv.dtype)   # stay in input dtype (bf16 stays bf16)
    o_ref[...] = jnp.where(keep, xv * scale, jnp.zeros_like(xv))


def _cdiv(a, b):
    return -(-a // b)


def dropout_pallas(x, drop_prob, seed=0):
    """Apply inverted elementwise dropout to `x` via the tiled Pallas kernel."""
    drop_prob = float(drop_prob)
    if drop_prob <= 0.0:
        return x  # static host-side short-circuit: identity, no kernel launch
    assert drop_prob < 1.0, "drop_prob must be < 1"

    orig_shape = x.shape
    total = x.size

    # Lane-dense padded 2-D slab: (rows, 1024) so the last dim fills vreg lanes.
    n_rows = _cdiv(total, LANE)
    if n_rows <= MAX_BLOCK_ROWS:
        padded_rows = max(8, _cdiv(n_rows, 8) * 8)
        block_rows = padded_rows
    else:
        block_rows = MAX_BLOCK_ROWS
        padded_rows = _cdiv(n_rows, block_rows) * block_rows
    padded_total = padded_rows * LANE

    xf = x.reshape(-1)
    if padded_total != total:
        xf = jnp.pad(xf, (0, padded_total - total))
    x2 = xf.reshape(padded_rows, LANE)

    seed_arr = jnp.asarray([seed], dtype=jnp.int32)
    thr = min(int(round(drop_prob * float(1 << 32))), (1 << 32) - 1)
    thr_arr = jnp.asarray([thr], dtype=jnp.uint32)
    scale_arr = jnp.asarray([1.0 / (1.0 - drop_prob)], dtype=jnp.float32)

    out2 = pl.pallas_call(
        _dropout_kernel,
        out_shape=jax.ShapeDtypeStruct(x2.shape, x.dtype),
        grid=(padded_rows // block_rows,),
        in_specs=[
            pl.BlockSpec(memory_space=pltpu.MemorySpace.SMEM),    # seed
            pl.BlockSpec(memory_space=pltpu.MemorySpace.SMEM),    # threshold
            pl.BlockSpec(memory_space=pltpu.MemorySpace.SMEM),    # scale
            pl.BlockSpec((block_rows, LANE), lambda i: (i, 0)),   # x tile
        ],
        out_specs=pl.BlockSpec((block_rows, LANE), lambda i: (i, 0)),
        compiler_params=pltpu.CompilerParams(
            dimension_semantics=("parallel",),  # shard row axis across TCs (v7x)
        ),
    )(seed_arr, thr_arr, scale_arr, x2)

    return out2.reshape(-1)[:total].reshape(orig_shape)


class PallasDropout:
    """Concrete inner module: elementwise inverted dropout with `drop_prob`."""

    def __init__(self, drop_prob=0.0):
        self.drop_prob = float(drop_prob)

    def __call__(self, x, seed=0):
        return dropout_pallas(x, self.drop_prob, seed)


class LinearScheduler:
    """JAX/Pallas port of the PyTorch LinearScheduler."""

    def __init__(self, module):
        self.module = module
        self.iter = 0

    def init(self, start_value, stop_value, nr_steps):
        assert self.iter == 0
        if nr_steps == 1:
            self.drop_values = [float(start_value)]
        else:
            step = (float(stop_value) - float(start_value)) / (nr_steps - 1)
            self.drop_values = [float(start_value) + step * i for i in range(nr_steps)]
        self.module.drop_prob = self.drop_values[self.iter]

    def __call__(self, x, seed=0):
        return self.module(x, seed)

    def step(self):
        assert hasattr(self, "drop_values"), "LinearScheduler must call init() first"
        self.iter += 1
        if self.iter < len(self.drop_values):
            self.module.drop_prob = self.drop_values[self.iter]


if __name__ == "__main__":
    key = jax.random.PRNGKey(0)
    x = jax.random.normal(key, (2, 4, 16, 16), dtype=jnp.float32)

    sched = LinearScheduler(PallasDropout())
    sched.init(start_value=0.0, stop_value=0.25, nr_steps=5)

    # iter 0: drop_prob == 0.0 -> identity (no kernel launch).
    y0 = jax.block_until_ready(sched(x, seed=0))
    assert y0.shape == x.shape and y0.dtype == x.dtype
    assert jnp.allclose(y0, x, atol=1e-6), "drop_prob=0 should be identity"

    # advance the schedule twice -> drop_prob == 0.125; this runs the kernel.
    sched.step()
    sched.step()
    p = sched.module.drop_prob
    y1 = jax.block_until_ready(sched(x, seed=123))
    assert y1.shape == x.shape and y1.dtype == x.dtype

    # every element is either dropped (exact 0) or scaled by 1/(1-p)
    kept = y1 != 0.0
    scale = 1.0 / (1.0 - p)
    assert jnp.allclose(y1[kept], (x * scale)[kept], rtol=1e-5, atol=1e-6)
    drop_frac = 1.0 - float(jnp.mean(kept.astype(jnp.float32)))
    assert 0.02 <= drop_frac <= 0.35, f"drop fraction {drop_frac} far from p={p}"

    print("KERNEL_OK")
</pallas_src>

<mosaic_0001>
module attributes {stable_mosaic.version = 11 : i64} {
  func.func @_dropout_kernel(%arg0: i32, %arg1: memref<1xi32, #tpu.memory_space<smem>>, %arg2: memref<1xi32, #tpu.memory_space<smem>>, %arg3: memref<1xf32, #tpu.memory_space<smem>>, %arg4: memref<8x1024xf32, #tpu.memory_space<vmem>>, %arg5: memref<8x1024xf32, #tpu.memory_space<vmem>>) attributes {dimension_semantics = [#tpu.dimension_semantics<parallel>], iteration_bounds = array<i64: 1>, scalar_prefetch = 0 : i64, scratch_operands = 0 : i64, tpu.core_type = #tpu.core_type<tc>, window_params = [{transform_indices = @transform_0, window_bounds = array<i64: 1>}, {transform_indices = @transform_1, window_bounds = array<i64: 1>}, {transform_indices = @transform_2, window_bounds = array<i64: 1>}, {transform_indices = @transform_3, window_bounds = array<i64: 8, 1024>}, {transform_indices = @transform_4, window_bounds = array<i64: 8, 1024>}]} {
    %0 = tpu.iota {dimensions = array<i32: 0>} : vector<8x1024xi32>
    %1 = tpu.iota {dimensions = array<i32: 1>} : vector<8x1024xi32>
    %c8_i32 = arith.constant 8 : i32
    %2 = arith.muli %arg0, %c8_i32 : i32
    %3 = vector.broadcast %2 : i32 to vector<8x1024xi32>
    %4 = arith.addi %3, %0 : vector<8x1024xi32>
    %c1024_i32 = arith.constant 1024 : i32
    %5 = vector.broadcast %c1024_i32 : i32 to vector<8x1024xi32>
    %6 = arith.muli %4, %5 : vector<8x1024xi32>
    %7 = arith.addi %6, %1 : vector<8x1024xi32>
    %c0 = arith.constant 0 : index
    %8 = memref.load %arg1[%c0] : memref<1xi32, #tpu.memory_space<smem>>
    %c-1640531527_i32 = arith.constant -1640531527 : i32
    %9 = arith.muli %8, %c-1640531527_i32 : i32
    %10 = vector.broadcast %9 : i32 to vector<8x1024xi32>
    %11 = arith.xori %7, %10 : vector<8x1024xi32>
    %c16_i32 = arith.constant 16 : i32
    %12 = vector.broadcast %c16_i32 : i32 to vector<8x1024xi32>
    %13 = arith.shrui %11, %12 : vector<8x1024xi32>
    %14 = arith.xori %11, %13 : vector<8x1024xi32>
    %c2146121005_i32 = arith.constant 2146121005 : i32
    %15 = vector.broadcast %c2146121005_i32 : i32 to vector<8x1024xi32>
    %16 = arith.muli %14, %15 : vector<8x1024xi32>
    %c15_i32 = arith.constant 15 : i32
    %17 = vector.broadcast %c15_i32 : i32 to vector<8x1024xi32>
    %18 = arith.shrui %16, %17 : vector<8x1024xi32>
    %19 = arith.xori %16, %18 : vector<8x1024xi32>
    %c-2073254261_i32 = arith.constant -2073254261 : i32
    %20 = vector.broadcast %c-2073254261_i32 : i32 to vector<8x1024xi32>
    %21 = arith.muli %19, %20 : vector<8x1024xi32>
    %c16_i32_0 = arith.constant 16 : i32
    %22 = vector.broadcast %c16_i32_0 : i32 to vector<8x1024xi32>
    %23 = arith.shrui %21, %22 : vector<8x1024xi32>
    %24 = arith.xori %21, %23 : vector<8x1024xi32>
    %c0_1 = arith.constant 0 : index
    %25 = memref.load %arg2[%c0_1] : memref<1xi32, #tpu.memory_space<smem>>
    %26 = vector.broadcast %25 : i32 to vector<8x1024xi32>
    %27 = arith.cmpi uge, %24, %26 : vector<8x1024xi32>
    %c0_2 = arith.constant 0 : index
    %c0_3 = arith.constant 0 : index
    %28 = vector.load %arg4[%c0_2, %c0_3] : memref<8x1024xf32, #tpu.memory_space<vmem>>, vector<8x1024xf32>
    %c0_4 = arith.constant 0 : index
    %29 = memref.load %arg3[%c0_4] : memref<1xf32, #tpu.memory_space<smem>>
    %30 = vector.broadcast %29 : f32 to vector<8x1024xf32>
    %31 = arith.mulf %28, %30 : vector<8x1024xf32>
    %cst = arith.constant 0.000000e+00 : f32
    %32 = vector.broadcast %cst : f32 to vector<8x1024xf32>
    %33 = arith.select %27, %31, %32 : vector<8x1024xi1>, vector<8x1024xf32>
    %c0_5 = arith.constant 0 : index
    %c0_6 = arith.constant 0 : index
    %34 = vector.load %arg5[%c0_5, %c0_6] : memref<8x1024xf32, #tpu.memory_space<vmem>>, vector<8x1024xf32>
    tpu.vector_store %arg5[%c0_5, %c0_6], %33 {strides = array<i32>} : memref<8x1024xf32, #tpu.memory_space<vmem>>, vector<8x1024xf32>,
    return
  }
  func.func @transform_0(%arg0: i32) -> i32 {
    %c0_i32 = arith.constant 0 : i32
    %c0_i32_0 = arith.constant 0 : i32
    return %c0_i32 : i32
  }
  func.func @transform_1(%arg0: i32) -> i32 {
    %c0_i32 = arith.constant 0 : i32
    %c0_i32_0 = arith.constant 0 : i32
    return %c0_i32 : i32
  }
  func.func @transform_2(%arg0: i32) -> i32 {
    %c0_i32 = arith.constant 0 : i32
    %c0_i32_0 = arith.constant 0 : i32
    return %c0_i32 : i32
  }
  func.func @transform_3(%arg0: i32) -> (i32, i32) {
    %c0_i32 = arith.constant 0 : i32
    %c0_i32_0 = arith.constant 0 : i32
    return %arg0, %c0_i32 : i32, i32
  }
  func.func @transform_4(%arg0: i32) -> (i32, i32) {
    %c0_i32 = arith.constant 0 : i32
    %c0_i32_0 = arith.constant 0 : i32
    return %arg0, %c0_i32 : i32, i32
  }
}

</mosaic_0001>

<bundles_post_ra>
// kernel: tpu_custom_call.1
= control target key start
LH: loop header
LB: loop body
LE: loop exit
PB: predicated region body
PF: predicated region fallthrough
CT: control target
= control target key end

     0   :  { %12 = vsyncpa [#allocation6], 0  ;;  %s363_s0 = inlined_call_operand.<no memory space> [shape: s32[1], index: 0, kind: input, shape index: {}]   ;;  %s364_s1 = inlined_call_operand.<no memory space> [shape: u32[1], index: 1, kind: input, shape index: {}]   ;;  %s365_s2 = inlined_call_operand.<no memory space> [shape: f32[1], index: 2, kind: input, shape index: {}]   ;;  %s366_s3 = inlined_call_operand.hbm [shape: f32[8,1024], index: 3, kind: input, shape index: {}]   ;;  %s367_s4 = inlined_call_operand.hbm [shape: f32[8,1024], index: 4, kind: output, shape index: {}]  }
   0x1   :  { %13 = vsyncpa [#allocation7], 0  ;;  %s25_s17 = sshll.u32 %s366_s3, 4  ;;  %s280_s18 = smov [#allocation5]   ;;  %s26_s17 = int_to_ptr.hbm [resolvable:$true] %s25_s17 }
   0x2   :  { %s27_s19 = sshll.u32 %s280_s18, 4  ;;  %s28_s19 = int_to_ptr.vmem [resolvable:$true] %s27_s19 }
   0x3   :  { %30 = dma.hbm_to_vmem [thread:$0]  %s26_s17, 1024, %s28_s19, [#allocation6]  }
   0x4   :  { %276 = dma.done.wait [#allocation6], 1024  }
   0x5   :  { %277 = vsyncadd [#allocation6], 4294966272  ;;  %v35_v0 = vlaneseq  ;;  %s59_s22 = smul.u32 2654435769, %s363_s0  ;;  %v134_v1 = vstv %s364_s1  ;;  %v321_v6 = vstv %s365_s2  ;;  %v159_v19 = vld [vmem:[#allocation5] sm:$0xff]  ;;  %v160_v20 = vld [vmem:[#allocation5 + $0x8] sm:$0xff] }
   0x6   :  { %v316_v5 = vxor.u32 2147483648, %v134_v1  ;;  %v161_v21 = vld [vmem:[#allocation5 + $0x10] sm:$0xff]  ;;  %v324_v27 = vmul.f32 %v321_v6, %v159_v19  ;;  %v327_v29 = vmul.f32 %v321_v6, %v160_v20  ;;  %v162_v30 = vld [vmem:[#allocation5 + $0x18] sm:$0xff]  ;;  %v163_v31 = vld [vmem:[#allocation5 + $0x20] sm:$0xff]  ;;  %s281_s0 = smov [#allocation8]   ;;  %s200_s27 = sshll.u32 %s367_s4, 4  ;;  %s201_s27 = int_to_ptr.hbm [resolvable:$true] %s200_s27 }
   0x7   :  { %v36_v2 = vshrl.u32 %v35_v0, 7  ;;  %v38_v3 = vand.u32 127, %v35_v0  ;;  %v60_v4 = vstv %s59_s22  ;;  %v164_v32 = vld [vmem:[#allocation5 + $0x28] sm:$0xff]  ;;  %v330_v34 = vmul.f32 %v321_v6, %v161_v21  ;;  %v165_v41 = vld [vmem:[#allocation5 + $0x30] sm:$0xff]  ;;  %s198_s1 = sshll.u32 %s281_s0, 4  ;;  %s199_s1 = int_to_ptr.vmem [resolvable:$true] %s198_s1 }
   0x8   :  { %v333_v36 = vmul.f32 %v321_v6, %v162_v30  ;;  %v336_v40 = vmul.f32 %v321_v6, %v163_v31  ;;  %v339_v45 = vmul.f32 %v321_v6, %v164_v32  ;;  %v342_v53 = vmul.f32 %v321_v6, %v165_v41 }
   0x9   :  { %v49_v7 = vmul.u32 1024, %v36_v2  ;;  %v39_v8 = vadd.s32 128, %v38_v3  ;;  %v40_v9 = vadd.s32 256, %v38_v3  ;;  %v41_v10 = vadd.s32 384, %v38_v3 }
   0xa   :  { %v42_v11 = vadd.s32 512, %v38_v3  ;;  %v43_v12 = vadd.s32 640, %v38_v3  ;;  %v44_v13 = vadd.s32 768, %v38_v3  ;;  %v45_v14 = vadd.s32 896, %v38_v3 }
   0xb   :  { %v50_v15 = vadd.s32 %v49_v7, %v38_v3  ;;  %v51_v16 = vadd.s32 %v49_v7, %v39_v8  ;;  %v52_v17 = vadd.s32 %v49_v7, %v40_v9  ;;  %v53_v18 = vadd.s32 %v49_v7, %v41_v10 }
   0xc   :  { %v54_v22 = vadd.s32 %v49_v7, %v42_v11  ;;  %v55_v23 = vadd.s32 %v49_v7, %v43_v12  ;;  %v56_v24 = vadd.s32 %v49_v7, %v44_v13  ;;  %v57_v25 = vadd.s32 %v49_v7, %v45_v14 }
   0xd   :  { %v61_v26 = vxor.u32 %v60_v4, %v50_v15  ;;  %v62_v28 = vxor.u32 %v60_v4, %v51_v16  ;;  %v63_v33 = vxor.u32 %v60_v4, %v52_v17  ;;  %v64_v35 = vxor.u32 %v60_v4, %v53_v18 }
   0xe   :  { %v65_v39 = vxor.u32 %v60_v4, %v54_v22  ;;  %v66_v44 = vxor.u32 %v60_v4, %v55_v23  ;;  %v67_v49 = vxor.u32 %v60_v4, %v56_v24  ;;  %v68_v61 = vxor.u32 %v60_v4, %v57_v25 }
   0xf   :  { %v69_v37 = vshrl.u32 %v61_v26, 16  ;;  %v70_v38 = vshrl.u32 %v62_v28, 16  ;;  %v71_v42 = vshrl.u32 %v63_v33, 16  ;;  %v72_v43 = vshrl.u32 %v64_v35, 16 }
  0x10   :  { %v73_v48 = vshrl.u32 %v65_v39, 16  ;;  %v74_v52 = vshrl.u32 %v66_v44, 16  ;;  %v75_v57 = vshrl.u32 %v67_v49, 16  ;;  %v76_v8 = vshrl.u32 %v68_v61, 16 }
  0x11   :  { %v77_v46 = vxor.u32 %v69_v37, %v61_v26  ;;  %v78_v47 = vxor.u32 %v70_v38, %v62_v28  ;;  %v79_v50 = vxor.u32 %v71_v42, %v63_v33  ;;  %v80_v51 = vxor.u32 %v72_v43, %v64_v35 }
  0x12   :  { %v81_v56 = vxor.u32 %v73_v48, %v65_v39  ;;  %v82_v60 = vxor.u32 %v74_v52, %v66_v44  ;;  %v83_v1 = vxor.u32 %v75_v57, %v67_v49  ;;  %v84_v16 = vxor.u32 %v76_v8, %v68_v61 }
  0x13   :  { %v85_v54 = vmul.u32 2146121005, %v77_v46  ;;  %v86_v55 = vmul.u32 2146121005, %v78_v47  ;;  %v87_v58 = vmul.u32 2146121005, %v79_v50 }
  0x14   :  { %v88_v59 = vmul.u32 2146121005, %v80_v51  ;;  %v89_v0 = vmul.u32 2146121005, %v81_v56  ;;  %v90_v7 = vmul.u32 2146121005, %v82_v60 }
  0x15   :  { %v93_v62 = vshrl.u32 %v85_v54, 15  ;;  %v94_v63 = vshrl.u32 %v86_v55, 15  ;;  %v95_v2 = vshrl.u32 %v87_v58, 15  ;;  %v91_v12 = vmul.u32 2146121005, %v83_v1 }
  0x16   :  { %v96_v3 = vshrl.u32 %v88_v59, 15  ;;  %v97_v11 = vshrl.u32 %v89_v0, 15  ;;  %v98_v15 = vshrl.u32 %v90_v7, 15  ;;  %v92_v23 = vmul.u32 2146121005, %v84_v16 }
  0x17   :  { %v101_v9 = vxor.u32 %v93_v62, %v85_v54  ;;  %v102_v10 = vxor.u32 %v94_v63, %v86_v55  ;;  %v103_v13 = vxor.u32 %v95_v2, %v87_v58  ;;  %v99_v4 = vshrl.u32 %v91_v12, 15 }
  0x18   :  { %v104_v14 = vxor.u32 %v96_v3, %v88_v59  ;;  %v105_v19 = vxor.u32 %v97_v11, %v89_v0  ;;  %v106_v22 = vxor.u32 %v98_v15, %v90_v7  ;;  %v100_v33 = vshrl.u32 %v92_v23, 15 }
  0x19   :  { %v109_v17 = vmul.u32 2221713035, %v101_v9  ;;  %v110_v18 = vmul.u32 2221713035, %v102_v10  ;;  %v111_v20 = vmul.u32 2221713035, %v103_v13  ;;  %v107_v28 = vxor.u32 %v99_v4, %v91_v12 }
  0x1a   :  { %v112_v21 = vmul.u32 2221713035, %v104_v14  ;;  %v113_v26 = vmul.u32 2221713035, %v105_v19  ;;  %v114_v32 = vmul.u32 2221713035, %v106_v22  ;;  %v108_v44 = vxor.u32 %v100_v33, %v92_v23 }
  0x1b   :  { %v117_v24 = vshrl.u32 %v109_v17, 16  ;;  %v118_v25 = vshrl.u32 %v110_v18, 16  ;;  %v119_v30 = vshrl.u32 %v111_v20, 16  ;;  %v115_v39 = vmul.u32 2221713035, %v107_v28 }
  0x1c   :  { %v120_v31 = vshrl.u32 %v112_v21, 16  ;;  %v121_v38 = vshrl.u32 %v113_v26, 16  ;;  %v122_v43 = vshrl.u32 %v114_v32, 16  ;;  %v116_v54 = vmul.u32 2221713035, %v108_v44 }
  0x1d   :  { %v125_v35 = vxor.u32 %v117_v24, %v109_v17  ;;  %v126_v37 = vxor.u32 %v118_v25, %v110_v18  ;;  %v127_v41 = vxor.u32 %v119_v30, %v111_v20  ;;  %v123_v49 = vshrl.u32 %v115_v39, 16 }
  0x1e   :  { %v128_v42 = vxor.u32 %v120_v31, %v112_v21  ;;  %v129_v48 = vxor.u32 %v121_v38, %v113_v26  ;;  %v130_v52 = vxor.u32 %v122_v43, %v114_v32  ;;  %v124_v0 = vshrl.u32 %v116_v54, 16 }
  0x1f   :  { %v210_v46 = vxor.u32 2147483648, %v125_v35  ;;  %v212_v47 = vxor.u32 2147483648, %v126_v37  ;;  %v214_v50 = vxor.u32 2147483648, %v127_v41  ;;  %v131_v56 = vxor.u32 %v123_v49, %v115_v39 }
  0x20   :  { %v216_v51 = vxor.u32 2147483648, %v128_v42  ;;  %v218_v55 = vxor.u32 2147483648, %v129_v48  ;;  %v220_v61 = vxor.u32 2147483648, %v130_v52 }
  0x21   :  { %vm137_vm0 = vcmp.ge.s32.totalorder %v210_v46, %v316_v5  ;;  %vm140_vm1 = vcmp.ge.s32.totalorder %v212_v47, %v316_v5  ;;  %vm143_vm2 = vcmp.ge.s32.totalorder %v214_v50, %v316_v5  ;;  %v222_v63 = vxor.u32 2147483648, %v131_v56 }
  0x22   :  { %v177_v57 = vsel %vm137_vm0, %v324_v27, 0.0  ;;  %v178_v58 = vsel %vm140_vm1, %v327_v29, 0.0  ;;  %vm146_vm3 = vcmp.ge.s32.totalorder %v216_v51, %v316_v5  ;;  %v179_v59 = vsel %vm143_vm2, %v330_v34, 0.0  ;;  %v166_v27 = vld [vmem:[#allocation5 + $0x38] sm:$0xff] }
  0x23   :  { %185 = vst [vmem:[#allocation8] sm:$0xff] %v177_v57  ;;  %v180_v60 = vsel %vm146_vm3, %v333_v36, 0.0  ;;  %vm149_vm4 = vcmp.ge.s32.totalorder %v218_v55, %v316_v5  ;;  %vm152_vm5 = vcmp.ge.s32.totalorder %v220_v61, %v316_v5  ;;  %vm155_vm6 = vcmp.ge.s32.totalorder %v222_v63, %v316_v5 }
  0x24   :  { %186 = vst [vmem:[#allocation8 + $0x8] sm:$0xff] %v178_v58  ;;  %v181_v62 = vsel %vm149_vm4, %v336_v40, 0.0  ;;  %v182_v29 = vsel %vm152_vm5, %v339_v45, 0.0  ;;  %v132_v34 = vxor.u32 %v124_v0, %v116_v54  ;;  %v183_v36 = vsel %vm155_vm6, %v342_v53, 0.0 }
  0x25   :  { %187 = vst [vmem:[#allocation8 + $0x10] sm:$0xff] %v179_v59  ;;  %v176_v1 = vmul.f32 %v321_v6, %v166_v27 }
  0x26   :  { %188 = vst [vmem:[#allocation8 + $0x18] sm:$0xff] %v180_v60  ;;  %v224_v40 = vxor.u32 2147483648, %v132_v34 }
  0x27   :  { %189 = vst [vmem:[#allocation8 + $0x20] sm:$0xff] %v181_v62 }
  0x28   :  { %190 = vst [vmem:[#allocation8 + $0x28] sm:$0xff] %v182_v29  ;;  %vm158_vm7 = vcmp.ge.s32.totalorder %v224_v40, %v316_v5 }
  0x29   :  { %191 = vst [vmem:[#allocation8 + $0x30] sm:$0xff] %v183_v36  ;;  %v184_v45 = vsel %vm158_vm7, %v176_v1, 0.0 }
  0x2a   :  { %192 = vst [vmem:[#allocation8 + $0x38] sm:$0xff] %v184_v45 }
  0x2b   :  { %203 = dma.vmem_to_hbm [thread:$0]  %s199_s1, 1024, %s201_s27, [#allocation7]  }
  0x2c   :  { %278 = dma.done.wait [#allocation7], 1024  }
  0x2d   :  { %279 = vsyncadd [#allocation7], 4294966272 }
  0x2e   :  { %208 = vsyncpa [#allocation6], 1 }
  0x2f   :  { %209 = vsyncpa [#allocation7], 1 }

</bundles_post_ra>
